<compile_context>
chip_gen: v7x
topology: tpu7x:2x2x1
jax: 0.10.0
libtpu: 0.0.40
codegen_flags: <defaults>
</compile_context>

<pallas_src>
import jax
import jax.numpy as jnp
from jax import lax
from jax.experimental import pallas as pl
from jax.experimental.pallas import tpu as pltpu


def _round_up(x, m):
    return ((x + m - 1) // m) * m


def _conv_matmul_kernel(a_ref, w_ref, b_ref, o_ref):
    # a_ref: (KCp, TM)   im2col'd input tile, output positions on the lane axis
    # w_ref: (Cout, KCp) transposed conv weight (tap-major, chan-minor), resident
    # b_ref: (Cout, 1)   f32 bias, resident
    # o_ref: (Cout, TM)
    acc = jnp.dot(w_ref[...], a_ref[...], preferred_element_type=jnp.float32)
    o_ref[...] = (acc + b_ref[...]).astype(o_ref.dtype)


def dilated_inception_ablation_forward(x_nchw, weight, bias, dilation_factor=2,
                                       compute_dtype=jnp.bfloat16, out_dtype=None):
    """Forward pass of dilated_inception_ablation (kernel_set=[7], padding=False)."""
    B, Cin, H, W = x_nchw.shape
    Cout, Cin_w, kh, K = weight.shape
    assert Cin_w == Cin and kh == 1
    d = dilation_factor
    Wout = W - (K - 1) * d
    assert Wout > 0, "input too short for kernel 7 with this dilation"
    out_dtype = x_nchw.dtype if out_dtype is None else out_dtype

    HWo = H * Wout                 # flattened output positions per batch (H is pointwise)
    KC = K * Cin                   # contraction depth
    KCp = _round_up(KC, 32)        # pad so bf16 sublane packing / (8,128) tiling is exact

    # ---- tiling: HWo on the 128-lane axis, zero-padded to a multiple of TM ----
    LANE = 128
    TM_CAP = 4096                  # large lane tiles: kernel is HBM-bound, amortize step overhead
    M128 = _round_up(HWo, LANE)
    TM = min(TM_CAP, M128)
    # keep >=2 total grid steps when there is enough work (v7x dual-TC sharding)
    if B * pl.cdiv(M128, TM) < 2 and M128 >= 2 * LANE:
        TM = _round_up(M128 // 2, LANE)
    M_pad = _round_up(HWo, TM)

    # ---- glue (XLA, intended to fuse into A's input DMA) ----
    # A[b, k*Cin+ci, h*Wout+t] = x[b, ci, h, t + k*d]   (tap-major, chan-minor)
    taps = [x_nchw[:, :, :, k * d: k * d + Wout] for k in range(K)]   # each (B, Cin, H, Wout)
    a = jnp.stack(taps, axis=1).reshape(B, KC, HWo).astype(compute_dtype)
    a = jnp.pad(a, ((0, 0), (0, KCp - KC), (0, M_pad - HWo)))
    # W2[co, k*Cin+ci] = weight[co, ci, 0, k]  -- same (tap, chan) order as A
    w2 = jnp.transpose(weight[:, :, 0, :], (0, 2, 1)).reshape(Cout, KC).astype(compute_dtype)
    w2 = jnp.pad(w2, ((0, 0), (0, KCp - KC)))
    b2 = bias.reshape(Cout, 1).astype(jnp.float32)

    in_isz = jnp.dtype(compute_dtype).itemsize
    out_isz = jnp.dtype(out_dtype).itemsize
    cost = pl.CostEstimate(
        flops=2 * B * M_pad * KCp * Cout,
        transcendentals=0,
        # assumes the im2col producer fuses into A's DMA -> raw input read once
        bytes_accessed=(B * Cin * H * W * in_isz
                        + Cout * KCp * in_isz + Cout * 4
                        + B * Cout * M_pad * out_isz),
    )

    out = pl.pallas_call(
        _conv_matmul_kernel,
        out_shape=jax.ShapeDtypeStruct((B, Cout, M_pad), out_dtype),
        grid_spec=pltpu.PrefetchScalarGridSpec(
            num_scalar_prefetch=0,
            grid=(B, M_pad // TM),
            in_specs=[
                pl.BlockSpec((pl.Squeezed(), KCp, TM), lambda b, i: (b, 0, i)),  # A tile, lane-dense
                pl.BlockSpec((Cout, KCp), lambda b, i: (0, 0)),                  # weight, resident
                pl.BlockSpec((Cout, 1), lambda b, i: (0, 0)),                    # bias, resident
            ],
            out_specs=pl.BlockSpec((pl.Squeezed(), Cout, TM), lambda b, i: (b, 0, i)),
        ),
        compiler_params=pltpu.CompilerParams(
            dimension_semantics=("parallel", "parallel"),
            allow_input_fusion=[True, False, False],      # fuse im2col into A's input DMA
        ),
        cost_estimate=cost,
    )(a, w2, b2)

    # NCHW output directly: slice off lane padding, un-flatten H*Wout (contiguous, no transpose)
    return out[:, :, :HWo].reshape(B, Cout, H, Wout)


def _reference(x_nchw, weight, bias, dilation_factor=2):
    """Pure-JAX reference (matches torch.nn.Conv2d semantics)."""
    out = lax.conv_general_dilated(
        x_nchw, weight,
        window_strides=(1, 1), padding="VALID",
        rhs_dilation=(1, dilation_factor),
        dimension_numbers=("NCHW", "OIHW", "NCHW"))
    return out + bias[None, :, None, None]


if __name__ == "__main__":
    B, Cin, Cout, H, W = 2, 4, 8, 16, 20
    K, dil = 7, 2

    key = jax.random.PRNGKey(0)
    kx, kw, kb = jax.random.split(key, 3)
    x = jax.random.normal(kx, (B, Cin, H, W), jnp.float32)

    # Deterministic in-script init; shapes match nn.Conv2d(cin, cout, (1,7)).
    fan_in = Cin * 1 * K
    bound = 1.0 / (fan_in ** 0.5)
    weight = jax.random.uniform(kw, (Cout, Cin, 1, K), jnp.float32, -bound, bound)
    bias = jax.random.uniform(kb, (Cout,), jnp.float32, -bound, bound)

    y_ref = _reference(x, weight, bias, dil)

    # Exact-precision path (f32 operands): validates layout/indexing tightly.
    fwd_f32 = jax.jit(
        lambda xi, wi, bi: dilated_inception_ablation_forward(
            xi, wi, bi, dil, compute_dtype=jnp.float32))
    y_f32 = jax.block_until_ready(fwd_f32(x, weight, bias))
    assert y_f32.shape == (B, Cout, H, W - (K - 1) * dil), y_f32.shape
    assert jnp.allclose(y_f32, y_ref, atol=1e-5, rtol=1e-5), "f32 path mismatch vs reference conv"

    # Performance path (bf16 operands, f32 MXU accumulation).
    fwd_bf16 = jax.jit(
        lambda xi, wi, bi: dilated_inception_ablation_forward(
            xi, wi, bi, dil, compute_dtype=jnp.bfloat16))
    y_bf16 = jax.block_until_ready(fwd_bf16(x, weight, bias))
    assert y_bf16.shape == (B, Cout, H, W - (K - 1) * dil), y_bf16.shape
    assert jnp.allclose(y_bf16, y_ref, atol=5e-2, rtol=5e-2), "bf16 path mismatch vs reference conv"

    print("KERNEL_OK")
</pallas_src>

<mosaic_0001>
module attributes {stable_mosaic.version = 11 : i64} {
  func.func @_conv_matmul_kernel(%arg0: i32, %arg1: i32, %arg2: memref<1x32x128xf32, #tpu.memory_space<vmem>>, %arg3: memref<8x32xf32, #tpu.memory_space<vmem>>, %arg4: memref<8x1xf32, #tpu.memory_space<vmem>>, %arg5: memref<1x8x128xf32, #tpu.memory_space<vmem>>) attributes {dimension_semantics = [#tpu.dimension_semantics<parallel>, #tpu.dimension_semantics<parallel>], iteration_bounds = array<i64: 2, 1>, scalar_prefetch = 0 : i64, scratch_operands = 0 : i64, tpu.core_type = #tpu.core_type<tc>, window_params = [{transform_indices = @transform_0, window_bounds = array<i64: 1, 32, 128>}, {pipeline_mode = #tpu.pipeline_mode<synchronous>, transform_indices = @transform_1, window_bounds = array<i64: 8, 32>}, {pipeline_mode = #tpu.pipeline_mode<synchronous>, transform_indices = @transform_2, window_bounds = array<i64: 8, 1>}, {transform_indices = @transform_3, window_bounds = array<i64: 1, 8, 128>}]} {
    %c0 = arith.constant 0 : index
    %c0_0 = arith.constant 0 : index
    %0 = vector.load %arg3[%c0, %c0_0] : memref<8x32xf32, #tpu.memory_space<vmem>>, vector<8x32xf32>
    %c0_1 = arith.constant 0 : index
    %c0_2 = arith.constant 0 : index
    %c0_3 = arith.constant 0 : index
    %1 = vector.load %arg2[%c0_1, %c0_2, %c0_3] : memref<1x32x128xf32, #tpu.memory_space<vmem>>, vector<1x32x128xf32>
    %2 = vector.shape_cast %1 : vector<1x32x128xf32> to vector<32x128xf32>
    %cst = arith.constant dense<0.000000e+00> : vector<8x128xf32>
    %3 = tpu.matmul %0, %2, %cst {dimension_numbers = #tpu.dot_dimension_numbers<[1], [0], [0], [1], [0, 0, 1, 1], [], []>} : vector<8x32xf32>, vector<32x128xf32>, vector<8x128xf32> -> vector<8x128xf32>
    %c0_4 = arith.constant 0 : index
    %c0_5 = arith.constant 0 : index
    %4 = vector.load %arg4[%c0_4, %c0_5] : memref<8x1xf32, #tpu.memory_space<vmem>>, vector<8x1xf32>
    %5 = vector.broadcast %4 : vector<8x1xf32> to vector<8x128xf32>
    %6 = arith.addf %3, %5 : vector<8x128xf32>
    %c0_6 = arith.constant 0 : index
    %c0_7 = arith.constant 0 : index
    %c0_8 = arith.constant 0 : index
    %7 = vector.load %arg5[%c0_6, %c0_7, %c0_8] : memref<1x8x128xf32, #tpu.memory_space<vmem>>, vector<1x8x128xf32>
    %8 = vector.shape_cast %7 : vector<1x8x128xf32> to vector<8x128xf32>
    %9 = vector.shape_cast %6 : vector<8x128xf32> to vector<1x8x128xf32>
    tpu.vector_store %arg5[%c0_6, %c0_7, %c0_8], %9 {strides = array<i32>} : memref<1x8x128xf32, #tpu.memory_space<vmem>>, vector<1x8x128xf32>,
    return
  }
  func.func @transform_0(%arg0: i32, %arg1: i32) -> (i32, i32, i32) {
    %c0_i32 = arith.constant 0 : i32
    %c0_i32_0 = arith.constant 0 : i32
    return %arg0, %c0_i32, %arg1 : i32, i32, i32
  }
  func.func @transform_1(%arg0: i32, %arg1: i32) -> (i32, i32) {
    %c0_i32 = arith.constant 0 : i32
    %c0_i32_0 = arith.constant 0 : i32
    %c0_i32_1 = arith.constant 0 : i32
    return %c0_i32, %c0_i32_0 : i32, i32
  }
  func.func @transform_2(%arg0: i32, %arg1: i32) -> (i32, i32) {
    %c0_i32 = arith.constant 0 : i32
    %c0_i32_0 = arith.constant 0 : i32
    %c0_i32_1 = arith.constant 0 : i32
    return %c0_i32, %c0_i32_0 : i32, i32
  }
  func.func @transform_3(%arg0: i32, %arg1: i32) -> (i32, i32, i32) {
    %c0_i32 = arith.constant 0 : i32
    %c0_i32_0 = arith.constant 0 : i32
    return %arg0, %c0_i32, %arg1 : i32, i32, i32
  }
}

</mosaic_0001>

<bundles_post_ra>
// kernel: _lambda_.2
= control target key start
LH: loop header
LB: loop body
LE: loop exit
PB: predicated region body
PF: predicated region fallthrough
CT: control target
= control target key end

     0   :  { %s525_s17 = smov 0   ;;  %s527_s18 = smov 0   ;;  %s564_s0 = inlined_call_operand.vmem [shape: f32[8,32], index: 0, kind: input, shape index: {}]   ;;  %s565_s1 = inlined_call_operand.vmem [shape: f32[8,1], index: 1, kind: input, shape index: {}]   ;;  %s566_s2 = inlined_call_operand.vmem [shape: f32[2,28,128], index: 2, kind: input, shape index: {}]   ;;  %s567_s3 = inlined_call_operand.<no memory space> [shape: f32[], index: 3, kind: input, shape index: {}]   ;;  %s568_s4 = inlined_call_operand.vmem [shape: f32[2,8,128], index: 4, kind: output, shape index: {}]  }
   0x1   :  { %v9_v0 = vstv %s567_s3  ;;  %s529_s19 = smov 0  }
   0x2 LB: > { %s27_s3 = sadd.s32 1, %s487_s18  ;;  %p407_p0 = scmp.ge.s32.totalorder %s491_s19, 1  ;;  %s491_s19 = sphi %s529_s19, %s15_s19   ;;  %s487_s18 = sphi %s527_s18, %s570_s18   ;;  %s483_s17 = sphi %s525_s17, %s569_s17  }
   0x3   : > { %p29_p1 = scmp.ge.s32.totalorder %s27_s3, 2  ;;  %p158_p2 = scmp.lt.s32.totalorder %s491_s19, 3 }
   0x5   : > { %s572_s3 = smov (%p29_p1, %s27_s3), 0  ;;  %p159_p3 = pnand %p407_p0, %p158_p2 }
   0x6   : > { %p187_p4 = scmp.lt.s32.totalorder (!%p159_p3), %s483_s17, 1  ;;  %v232_v1 = vlaneseq (!%p159_p3)  ;;  %v245_v2 = vld [vmem:[%s565_s1] sm:$0xff] (!%p159_p3)  ;;  %v493_v3 = vmov (!%p159_p3), 0.0|0.0   ;;  %vm494_vm0 = vmmov (!%p159_p3), 0   ;;  %v495_v4 = vmov (!%p159_p3), 0.0  }
   0x7   : > { %162 = sbr.rel (%p159_p3) target bundleno = 242 (0xf2), region = 32  ;;  %434 = vmatprep.subr.bf16.mxu0 (!%p159_p3), %v493_v3  ;;  %431 = vmatprep.mubr.msk.f32.mxu0 (!%p159_p3), %vm494_vm0, %v495_v4  ;;  %v496_v6 = vmov (!%p159_p3), 0   ;;  %v240_v15 = vld [vmem:[%s564_s0] sm:$0xff] (!%p159_p3)  ;;  %vm251_vm2 = vcmask (!%p159_p3), 261120  }
   0x8   : > { %v233_v5 = vshrl.u32 (!%p159_p3), %v232_v1, 7  ;;  %468 = vset.pattern.permute.xlu0 (!%p159_p3), %v496_v6 }
   0x9   : > { %248 = vperm.xlu0 (!%p159_p3), %468, %v245_v2  }
   0xa   : > { %v234_v7 = vadd.s32 (!%p159_p3), 24, %v233_v5 }
   0xc   : > { %vm235_vm1 = vcmp.lt.s32.totalorder (!%p159_p3), %v234_v7, 28 }
   0xe   : > { %s574_s17 = smov (!%p187_p4, %s483_s17), 1 }
   0xf   : > { %s417_s22 = sshll.u32 %s574_s17, 5  ;;  %s410_s28 = sshll.u32 %s574_s17, 3 }
  0x10   : > { %s194_s25 = scalar_lea.vmem %s566_s2, %s417_s22  ;;  %s201_s5 = scalar_lea.vmem %s568_s4, %s410_s28 }
  0x11   : > { %v202_v8 = vld [vmem:[%s194_s25] sm:$0xff]  ;;  %v411_v9 = vld [vmem:[%s194_s25 + $0x8] sm:$0xff]  ;;  %v412_v10 = vld [vmem:[%s194_s25 + $0x10] sm:$0xff] }
  0x12   : > { %v435_v11 = vpack.c.bf16 %v411_v9, %v202_v8  ;;  %v413_v12 = vld [vmem:[%s194_s25 + $0x18] sm:$0xff] }
  0x13   : > { %v236_v13 = vsel %vm235_vm1, %v413_v12, %v9_v0 }
  0x14   : > { %436 = vmatpush3.bf16.msra.mxu0 %v435_v11  ;;  %v438_v14 = vpack.c.bf16 %v236_v13, %v412_v10 }
  0x15   : > { %437 = vmatprep.subr.bf16.mxu0 %v493_v3 }
  0x18   : > { %439 = vmatpush3.bf16.msra.mxu0 %v438_v14 }
  0x1b   : > { %432 = vmatmul.mubr.msk.f32.vlgmr.msra.gmra.mrb[0].mxu0 %vm251_vm2, %v240_v15 }
  0x88   : > { %v249_v16 = vpop.permute.xlu0 %248 }
  0xee   : > { %v321_v17 = vpop.f32.mrb[0].mxu0 }
  0xef   : > { %v322_v18 = vadd.f32 %v321_v17, %v249_v16  ;;  %v433_v19 = vpop.f32.mrb[1].mxu0 }
  0xf1   : > { %325 = vst [vmem:[%s201_s5] sm:$0xff] %v322_v18 }
  0xf2 PF: > { %s15_s19 = sadd.s32 1, %s491_s19   ;;  %s569_s17 = smov %s487_s18 }
  0xf3   : > { %p12_p5 = scmp.ge.s32.totalorder %s15_s19, 4   ;;  %s570_s18 = smov %s572_s3 }
  0xf5   :  { %14 = sbr.rel (!%p12_p5) target bundleno = 2 (0x2), region = 68 }

</bundles_post_ra>
